<compile_context>
chip_gen: v5e
topology: v5e:2x2
jax: 0.10.0
libtpu: 0.0.40
codegen_flags: <defaults>
</compile_context>

<pallas_src>
import jax
import jax.numpy as jnp
from jax.experimental import pallas as pl
from jax.experimental.pallas import tpu as pltpu

# --- problem sizes consistent with the module ---
D_MODEL = 32
N_HEAD = 4
HEAD_DIM = D_MODEL // N_HEAD
D_HIDDEN = D_MODEL * 2
SEQ = 8
BATCH = 2
EPS = 1e-5  # nn.LayerNorm default
NEG_INF = -1e30


def _layernorm(x, w, b):
    mu = jnp.mean(x, axis=-1, keepdims=True)
    var = jnp.mean((x - mu) ** 2, axis=-1, keepdims=True)
    return (x - mu) * jax.lax.rsqrt(var + EPS) * w + b


def _block_kernel(x_ref, params_ref, out_ref):
    # TODO(synk): the module's optional external attn_mask is not implemented;
    # this covers the attn_mask=None configuration used by the forward pass.
    R, E = x_ref.shape                    # R = SEQ*BATCH rows in (l, n) row order
    H = N_HEAD
    Dh = E // H
    HR = H * R
    Dhid = 2 * E
    vr = E + HR + E                       # first row of the packed 1-D params

    x = x_ref[...]                        # (R, E)

    # --- unpack the single lane-dense parameter slab (all slices are static) ---
    w_qkv = params_ref[0:E, 0:3 * E]              # (E, 3E)  per-head [q|k|v] chunks
    wo    = params_ref[0:E, 3 * E:4 * E]          # (E, E)
    mask  = params_ref[E:E + HR, 0:HR]            # (HR, HR) additive 0 / -1e30
    w_pr  = params_ref[E:E + HR, HR:HR + E]       # (2E, E)
    w_fc  = params_ref[E + HR:E + HR + E, 0:Dhid]  # (E, 2E)
    b_qkv = params_ref[vr + 0:vr + 1, 0:3 * E]    # (1, 3E)
    bo    = params_ref[vr + 1:vr + 2, 0:E]
    b_fc  = params_ref[vr + 2:vr + 3, 0:Dhid]
    b_pr  = params_ref[vr + 3:vr + 4, 0:E]
    ln1w  = params_ref[vr + 4:vr + 5, 0:E]
    ln1b  = params_ref[vr + 5:vr + 6, 0:E]
    ln2w  = params_ref[vr + 6:vr + 7, 0:E]
    ln2b  = params_ref[vr + 7:vr + 8, 0:E]

    # ---- ln_1 + self-attention ----
    h = _layernorm(x, ln1w, ln1b)                                   # (R, E)

    # single fused QKV projection (1/sqrt(Dh) already folded into q cols/bias)
    qkv = jnp.dot(h, w_qkv, preferred_element_type=jnp.float32) + b_qkv  # (R, 3E)

    # fold heads into sublanes: per-head 3*Dh lane chunks -> (H*R, 3*Dh)
    qkv_f = jnp.concatenate(
        [qkv[:, i * 3 * Dh:(i + 1) * 3 * Dh] for i in range(H)], axis=0)
    q = qkv_f[:, 0:Dh]                                              # (HR, Dh)
    k = qkv_f[:, Dh:2 * Dh]
    v = qkv_f[:, 2 * Dh:3 * Dh]

    # one score matmul + one PV matmul for all heads / batches
    s = jnp.einsum('rd,sd->rs', q, k,
                   preferred_element_type=jnp.float32)              # (HR, HR)
    s = s + mask                                                    # head-block + batch mask
    s = s - jnp.max(s, axis=-1, keepdims=True)
    p = jnp.exp(s)
    p = p * pl.reciprocal(jnp.sum(p, axis=-1, keepdims=True), approx=False)
    o = jnp.dot(p, v, preferred_element_type=jnp.float32)           # (HR, Dh)

    # unfold heads back onto lanes: (HR, Dh) -> (R, H*Dh) = (R, E)
    o2 = jnp.concatenate([o[i * R:(i + 1) * R, :] for i in range(H)], axis=1)

    # fused output projection
    attn = jnp.dot(o2, wo, preferred_element_type=jnp.float32) + bo
    x = x + attn                                                    # residual 1

    # ---- ln_2 + MLP (c_fc -> QuickGELU -> c_proj) ----
    h2 = _layernorm(x, ln2w, ln2b)
    u = jnp.dot(h2, w_fc, preferred_element_type=jnp.float32) + b_fc
    u = u * jax.nn.sigmoid(1.702 * u)                               # QuickGELU
    m = jnp.dot(u, w_pr, preferred_element_type=jnp.float32) + b_pr

    out_ref[...] = x + m                                            # residual 2


def pack_params(params):
    """Pack the 16 raw parameter tensors (plus static masks/scales) into one
    lane-dense (136, 128) f32 slab.  Done once, outside the kernel."""
    (ln1w, ln1b, wq, wk, wv, bq, bk, bv, wo, bo,
     ln2w, ln2b, wfc, bfc, wpr, bpr) = params
    E, H, Dh, Dhid = D_MODEL, N_HEAD, HEAD_DIM, D_HIDDEN
    R = SEQ * BATCH
    HR = H * R
    scale = 1.0 / (Dh ** 0.5)

    # Wqkv columns: per-head [q_h * scale | k_h | v_h] chunks of width 3*Dh
    wcols, bcols = [], []
    for h in range(H):
        sl = slice(h * Dh, (h + 1) * Dh)
        wcols += [wq[:, sl] * scale, wk[:, sl], wv[:, sl]]
        bcols += [bq[sl] * scale, bk[sl], bv[sl]]
    w_qkv = jnp.concatenate(wcols, axis=1)                     # (E, 3E)
    b_qkv = jnp.concatenate(bcols, axis=0)                     # (3E,)

    # additive mask over folded (head*R) rows: valid iff same head AND same batch
    idx = jnp.arange(HR)
    head = idx // R
    batch = (idx % R) % BATCH                 # row r of x2d belongs to batch r % BATCH
    valid = (head[:, None] == head[None, :]) & (batch[:, None] == batch[None, :])
    mask = jnp.where(valid, 0.0, NEG_INF).astype(jnp.float32)  # (HR, HR)

    n_rows = E + HR + E + 8                   # 32 + 64 + 32 + 8 = 136
    slab = jnp.zeros((n_rows, 128), jnp.float32)
    slab = slab.at[0:E, 0:3 * E].set(w_qkv)
    slab = slab.at[0:E, 3 * E:4 * E].set(wo)
    slab = slab.at[E:E + HR, 0:HR].set(mask)
    slab = slab.at[E:E + HR, HR:HR + E].set(wpr)
    slab = slab.at[E + HR:E + HR + E, 0:Dhid].set(wfc)
    vr = E + HR + E
    slab = slab.at[vr + 0, 0:3 * E].set(b_qkv)
    slab = slab.at[vr + 1, 0:E].set(bo)
    slab = slab.at[vr + 2, 0:Dhid].set(bfc)
    slab = slab.at[vr + 3, 0:E].set(bpr)
    slab = slab.at[vr + 4, 0:E].set(ln1w)
    slab = slab.at[vr + 5, 0:E].set(ln1b)
    slab = slab.at[vr + 6, 0:E].set(ln2w)
    slab = slab.at[vr + 7, 0:E].set(ln2b)
    return slab


def residual_attention_block(x_lne, params_slab):
    """x_lne: (L, N, E) float32 — the PyTorch (seq, batch, d_model) layout."""
    L, N, E = x_lne.shape
    x2d = x_lne.reshape(L * N, E)   # free contiguous reshape; row i -> (l=i//N, n=i%N)

    out2d = pl.pallas_call(
        _block_kernel,
        out_shape=jax.ShapeDtypeStruct((L * N, E), x_lne.dtype),
        in_specs=[pl.BlockSpec(memory_space=pltpu.MemorySpace.VMEM),
                  pl.BlockSpec(memory_space=pltpu.MemorySpace.VMEM)],
        out_specs=pl.BlockSpec(memory_space=pltpu.MemorySpace.VMEM),
    )(x2d, params_slab)

    return out2d.reshape(L, N, E)


def _reference(x_lne, params):
    """Plain-JAX mirror of the PyTorch forward for a correctness check."""
    (ln1w, ln1b, wq, wk, wv, bq, bk, bv, wo, bo,
     ln2w, ln2b, wfc, bfc, wpr, bpr) = params
    x = jnp.transpose(x_lne, (1, 0, 2))              # (N, L, E)

    h = _layernorm(x, ln1w, ln1b)
    q = h @ wq + bq
    k = h @ wk + bk
    v = h @ wv + bv
    N, L, E = x.shape
    qh = q.reshape(N, L, N_HEAD, HEAD_DIM)
    kh = k.reshape(N, L, N_HEAD, HEAD_DIM)
    vh = v.reshape(N, L, N_HEAD, HEAD_DIM)
    s = jnp.einsum('nlhd,nmhd->nhlm', qh, kh) / (HEAD_DIM ** 0.5)
    p = jax.nn.softmax(s, axis=-1)
    o = jnp.einsum('nhlm,nmhd->nlhd', p, vh).reshape(N, L, E)
    x = x + (o @ wo + bo)

    h2 = _layernorm(x, ln2w, ln2b)
    u = h2 @ wfc + bfc
    u = u * jax.nn.sigmoid(1.702 * u)
    x = x + (u @ wpr + bpr)
    return jnp.transpose(x, (1, 0, 2))


def _init_params(key):
    E, Hd = D_MODEL, D_HIDDEN
    ks = jax.random.split(key, 12)
    s = 0.02
    # attention in-proj (stored pre-transposed so the kernel computes h @ W)
    wq = s * jax.random.normal(ks[0], (E, E), jnp.float32)
    wk = s * jax.random.normal(ks[1], (E, E), jnp.float32)
    wv = s * jax.random.normal(ks[2], (E, E), jnp.float32)
    bq = s * jax.random.normal(ks[3], (E,), jnp.float32)
    bk = s * jax.random.normal(ks[4], (E,), jnp.float32)
    bv = s * jax.random.normal(ks[5], (E,), jnp.float32)
    wo = s * jax.random.normal(ks[6], (E, E), jnp.float32)
    bo = s * jax.random.normal(ks[7], (E,), jnp.float32)
    # MLP
    wfc = s * jax.random.normal(ks[8], (E, Hd), jnp.float32)
    bfc = s * jax.random.normal(ks[9], (Hd,), jnp.float32)
    wpr = s * jax.random.normal(ks[10], (Hd, E), jnp.float32)
    bpr = s * jax.random.normal(ks[11], (E,), jnp.float32)
    # LayerNorms (affine)
    ln1w = jnp.ones((E,), jnp.float32)
    ln1b = jnp.zeros((E,), jnp.float32)
    ln2w = jnp.ones((E,), jnp.float32)
    ln2b = jnp.zeros((E,), jnp.float32)
    return (ln1w, ln1b, wq, wk, wv, bq, bk, bv, wo, bo,
            ln2w, ln2b, wfc, bfc, wpr, bpr)


if __name__ == "__main__":
    key = jax.random.PRNGKey(0)
    k_x, k_p = jax.random.split(key)
    # (seq, batch, d_model) — same convention as the PyTorch module's forward
    x = jax.random.normal(k_x, (SEQ, BATCH, D_MODEL), jnp.float32)
    params = _init_params(k_p)
    params_slab = pack_params(params)

    out = residual_attention_block(x, params_slab)
    out = jax.block_until_ready(out)

    ref = _reference(x, params)
    assert out.shape == (SEQ, BATCH, D_MODEL)
    err = float(jnp.max(jnp.abs(out - ref)))
    assert err < 1e-3, err   # exact softmax reciprocal -> only matmul-order noise

    print("KERNEL_OK")
</pallas_src>

<mosaic_0001>
module attributes {stable_mosaic.version = 11 : i64} {
  func.func @_block_kernel(%arg0: memref<16x32xf32, #tpu.memory_space<vmem>>, %arg1: memref<136x128xf32, #tpu.memory_space<vmem>>, %arg2: memref<16x32xf32, #tpu.memory_space<vmem>>) attributes {dimension_semantics = [], scalar_prefetch = 0 : i64, scratch_operands = 0 : i64, tpu.core_type = #tpu.core_type<tc>} {
    %c0 = arith.constant 0 : index
    %c0_0 = arith.constant 0 : index
    %0 = vector.load %arg0[%c0, %c0_0] : memref<16x32xf32, #tpu.memory_space<vmem>>, vector<16x32xf32>
    %c0_1 = arith.constant 0 : index
    %c0_2 = arith.constant 0 : index
    %1 = vector.load %arg1[%c0_1, %c0_2] : memref<136x128xf32, #tpu.memory_space<vmem>>, vector<32x96xf32>
    %c0_3 = arith.constant 0 : index
    %c96 = arith.constant 96 : index
    %2 = vector.load %arg1[%c0_3, %c96] : memref<136x128xf32, #tpu.memory_space<vmem>>, vector<32x32xf32>
    %c32 = arith.constant 32 : index
    %c0_4 = arith.constant 0 : index
    %3 = vector.load %arg1[%c32, %c0_4] : memref<136x128xf32, #tpu.memory_space<vmem>>, vector<64x64xf32>
    %c32_5 = arith.constant 32 : index
    %c64 = arith.constant 64 : index
    %4 = vector.load %arg1[%c32_5, %c64] : memref<136x128xf32, #tpu.memory_space<vmem>>, vector<64x32xf32>
    %c96_6 = arith.constant 96 : index
    %c0_7 = arith.constant 0 : index
    %5 = vector.load %arg1[%c96_6, %c0_7] : memref<136x128xf32, #tpu.memory_space<vmem>>, vector<32x64xf32>
    %c128 = arith.constant 128 : index
    %c0_8 = arith.constant 0 : index
    %6 = vector.load %arg1[%c128, %c0_8] : memref<136x128xf32, #tpu.memory_space<vmem>>, vector<1x96xf32>
    %c129 = arith.constant 129 : index
    %c0_9 = arith.constant 0 : index
    %7 = vector.load %arg1[%c129, %c0_9] : memref<136x128xf32, #tpu.memory_space<vmem>>, vector<1x32xf32>
    %c130 = arith.constant 130 : index
    %c0_10 = arith.constant 0 : index
    %8 = vector.load %arg1[%c130, %c0_10] : memref<136x128xf32, #tpu.memory_space<vmem>>, vector<1x64xf32>
    %c131 = arith.constant 131 : index
    %c0_11 = arith.constant 0 : index
    %9 = vector.load %arg1[%c131, %c0_11] : memref<136x128xf32, #tpu.memory_space<vmem>>, vector<1x32xf32>
    %c132 = arith.constant 132 : index
    %c0_12 = arith.constant 0 : index
    %10 = vector.load %arg1[%c132, %c0_12] : memref<136x128xf32, #tpu.memory_space<vmem>>, vector<1x32xf32>
    %c133 = arith.constant 133 : index
    %c0_13 = arith.constant 0 : index
    %11 = vector.load %arg1[%c133, %c0_13] : memref<136x128xf32, #tpu.memory_space<vmem>>, vector<1x32xf32>
    %c134 = arith.constant 134 : index
    %c0_14 = arith.constant 0 : index
    %12 = vector.load %arg1[%c134, %c0_14] : memref<136x128xf32, #tpu.memory_space<vmem>>, vector<1x32xf32>
    %c135 = arith.constant 135 : index
    %c0_15 = arith.constant 0 : index
    %13 = vector.load %arg1[%c135, %c0_15] : memref<136x128xf32, #tpu.memory_space<vmem>>, vector<1x32xf32>
    %cst = arith.constant dense<0.000000e+00> : vector<16xf32>
    %14 = vector.multi_reduction <add>, %0, %cst [1] : vector<16x32xf32> to vector<16xf32>
    %15 = vector.shape_cast %14 : vector<16xf32> to vector<16x1xf32>
    %cst_16 = arith.constant 3.200000e+01 : f32
    %16 = vector.broadcast %cst_16 : f32 to vector<16x1xf32>
    %17 = arith.divf %15, %16 : vector<16x1xf32>
    %18 = vector.broadcast %17 : vector<16x1xf32> to vector<16x32xf32>
    %19 = arith.subf %0, %18 : vector<16x32xf32>
    %20 = arith.mulf %19, %19 : vector<16x32xf32>
    %cst_17 = arith.constant dense<0.000000e+00> : vector<16xf32>
    %21 = vector.multi_reduction <add>, %20, %cst_17 [1] : vector<16x32xf32> to vector<16xf32>
    %22 = vector.shape_cast %21 : vector<16xf32> to vector<16x1xf32>
    %cst_18 = arith.constant 3.200000e+01 : f32
    %23 = vector.broadcast %cst_18 : f32 to vector<16x1xf32>
    %24 = arith.divf %22, %23 : vector<16x1xf32>
    %25 = vector.broadcast %17 : vector<16x1xf32> to vector<16x32xf32>
    %26 = arith.subf %0, %25 : vector<16x32xf32>
    %cst_19 = arith.constant 9.99999974E-6 : f32
    %27 = vector.broadcast %cst_19 : f32 to vector<16x1xf32>
    %28 = arith.addf %24, %27 : vector<16x1xf32>
    %29 = math.rsqrt %28 : vector<16x1xf32>
    %30 = vector.broadcast %29 : vector<16x1xf32> to vector<16x32xf32>
    %31 = arith.mulf %26, %30 : vector<16x32xf32>
    %32 = vector.broadcast %10 : vector<1x32xf32> to vector<16x32xf32>
    %33 = arith.mulf %31, %32 : vector<16x32xf32>
    %34 = vector.broadcast %11 : vector<1x32xf32> to vector<16x32xf32>
    %35 = arith.addf %33, %34 : vector<16x32xf32>
    %cst_20 = arith.constant dense<0.000000e+00> : vector<16x96xf32>
    %36 = tpu.matmul %35, %1, %cst_20 {dimension_numbers = #tpu.dot_dimension_numbers<[1], [0], [0], [1], [0, 0, 1, 1], [], []>} : vector<16x32xf32>, vector<32x96xf32>, vector<16x96xf32> -> vector<16x96xf32>
    %37 = vector.broadcast %6 : vector<1x96xf32> to vector<16x96xf32>
    %38 = arith.addf %36, %37 : vector<16x96xf32>
    %39 = vector.extract_strided_slice %38 {offsets = [0, 0], sizes = [16, 24], strides = [1, 1]} : vector<16x96xf32> to vector<16x24xf32>
    %40 = vector.extract_strided_slice %38 {offsets = [0, 24], sizes = [16, 24], strides = [1, 1]} : vector<16x96xf32> to vector<16x24xf32>
    %41 = vector.extract_strided_slice %38 {offsets = [0, 48], sizes = [16, 24], strides = [1, 1]} : vector<16x96xf32> to vector<16x24xf32>
    %42 = vector.extract_strided_slice %38 {offsets = [0, 72], sizes = [16, 24], strides = [1, 1]} : vector<16x96xf32> to vector<16x24xf32>
    %43 = tpu.concatenate %39, %40, %41, %42 in 0 : vector<16x24xf32>, vector<16x24xf32>, vector<16x24xf32>, vector<16x24xf32> -> vector<64x24xf32>
    %44 = vector.extract_strided_slice %43 {offsets = [0, 0], sizes = [64, 8], strides = [1, 1]} : vector<64x24xf32> to vector<64x8xf32>
    %45 = vector.extract_strided_slice %43 {offsets = [0, 8], sizes = [64, 8], strides = [1, 1]} : vector<64x24xf32> to vector<64x8xf32>
    %46 = vector.extract_strided_slice %43 {offsets = [0, 16], sizes = [64, 8], strides = [1, 1]} : vector<64x24xf32> to vector<64x8xf32>
    "tpu.trace_start"() <{level = 10 : i32, message = "rd,sd->rs"}> : () -> ()
    %cst_21 = arith.constant dense<0.000000e+00> : vector<64x64xf32>
    %47 = tpu.matmul %44, %45, %cst_21 {dimension_numbers = #tpu.dot_dimension_numbers<[1], [1], [0], [0], [0, 0, 1, 0], [], []>} : vector<64x8xf32>, vector<64x8xf32>, vector<64x64xf32> -> vector<64x64xf32>
    "tpu.trace_stop"() : () -> ()
    %48 = arith.addf %47, %3 : vector<64x64xf32>
    %cst_22 = arith.constant dense<0xFF800000> : vector<64xf32>
    %49 = vector.multi_reduction <maximumf>, %48, %cst_22 [1] : vector<64x64xf32> to vector<64xf32>
    %50 = vector.shape_cast %49 : vector<64xf32> to vector<64x1xf32>
    %51 = vector.broadcast %50 : vector<64x1xf32> to vector<64x64xf32>
    %52 = arith.subf %48, %51 : vector<64x64xf32>
    %53 = math.exp %52 : vector<64x64xf32>
    %cst_23 = arith.constant dense<0.000000e+00> : vector<64xf32>
    %54 = vector.multi_reduction <add>, %53, %cst_23 [1] : vector<64x64xf32> to vector<64xf32>
    %55 = vector.shape_cast %54 : vector<64xf32> to vector<64x1xf32>
    %56 = tpu.reciprocal %55 : vector<64x1xf32> -> vector<64x1xf32>
    %57 = vector.broadcast %56 : vector<64x1xf32> to vector<64x64xf32>
    %58 = arith.mulf %53, %57 : vector<64x64xf32>
    %cst_24 = arith.constant dense<0.000000e+00> : vector<64x8xf32>
    %59 = tpu.matmul %58, %46, %cst_24 {dimension_numbers = #tpu.dot_dimension_numbers<[1], [0], [0], [1], [0, 0, 1, 1], [], []>} : vector<64x64xf32>, vector<64x8xf32>, vector<64x8xf32> -> vector<64x8xf32>
    %60 = vector.extract_strided_slice %59 {offsets = [0, 0], sizes = [16, 8], strides = [1, 1]} : vector<64x8xf32> to vector<16x8xf32>
    %61 = vector.extract_strided_slice %59 {offsets = [16, 0], sizes = [16, 8], strides = [1, 1]} : vector<64x8xf32> to vector<16x8xf32>
    %62 = vector.extract_strided_slice %59 {offsets = [32, 0], sizes = [16, 8], strides = [1, 1]} : vector<64x8xf32> to vector<16x8xf32>
    %63 = vector.extract_strided_slice %59 {offsets = [48, 0], sizes = [16, 8], strides = [1, 1]} : vector<64x8xf32> to vector<16x8xf32>
    %64 = tpu.concatenate %60, %61, %62, %63 in 1 : vector<16x8xf32>, vector<16x8xf32>, vector<16x8xf32>, vector<16x8xf32> -> vector<16x32xf32>
    %cst_25 = arith.constant dense<0.000000e+00> : vector<16x32xf32>
    %65 = tpu.matmul %64, %2, %cst_25 {dimension_numbers = #tpu.dot_dimension_numbers<[1], [0], [0], [1], [0, 0, 1, 1], [], []>} : vector<16x32xf32>, vector<32x32xf32>, vector<16x32xf32> -> vector<16x32xf32>
    %66 = vector.broadcast %7 : vector<1x32xf32> to vector<16x32xf32>
    %67 = arith.addf %65, %66 : vector<16x32xf32>
    %68 = arith.addf %0, %67 : vector<16x32xf32>
    %cst_26 = arith.constant dense<0.000000e+00> : vector<16xf32>
    %69 = vector.multi_reduction <add>, %68, %cst_26 [1] : vector<16x32xf32> to vector<16xf32>
    %70 = vector.shape_cast %69 : vector<16xf32> to vector<16x1xf32>
    %cst_27 = arith.constant 3.200000e+01 : f32
    %71 = vector.broadcast %cst_27 : f32 to vector<16x1xf32>
    %72 = arith.divf %70, %71 : vector<16x1xf32>
    %73 = vector.broadcast %72 : vector<16x1xf32> to vector<16x32xf32>
    %74 = arith.subf %68, %73 : vector<16x32xf32>
    %75 = arith.mulf %74, %74 : vector<16x32xf32>
    %cst_28 = arith.constant dense<0.000000e+00> : vector<16xf32>
    %76 = vector.multi_reduction <add>, %75, %cst_28 [1] : vector<16x32xf32> to vector<16xf32>
    %77 = vector.shape_cast %76 : vector<16xf32> to vector<16x1xf32>
    %cst_29 = arith.constant 3.200000e+01 : f32
    %78 = vector.broadcast %cst_29 : f32 to vector<16x1xf32>
    %79 = arith.divf %77, %78 : vector<16x1xf32>
    %80 = vector.broadcast %72 : vector<16x1xf32> to vector<16x32xf32>
    %81 = arith.subf %68, %80 : vector<16x32xf32>
    %cst_30 = arith.constant 9.99999974E-6 : f32
    %82 = vector.broadcast %cst_30 : f32 to vector<16x1xf32>
    %83 = arith.addf %79, %82 : vector<16x1xf32>
    %84 = math.rsqrt %83 : vector<16x1xf32>
    %85 = vector.broadcast %84 : vector<16x1xf32> to vector<16x32xf32>
    %86 = arith.mulf %81, %85 : vector<16x32xf32>
    %87 = vector.broadcast %12 : vector<1x32xf32> to vector<16x32xf32>
    %88 = arith.mulf %86, %87 : vector<16x32xf32>
    %89 = vector.broadcast %13 : vector<1x32xf32> to vector<16x32xf32>
    %90 = arith.addf %88, %89 : vector<16x32xf32>
    %cst_31 = arith.constant dense<0.000000e+00> : vector<16x64xf32>
    %91 = tpu.matmul %90, %5, %cst_31 {dimension_numbers = #tpu.dot_dimension_numbers<[1], [0], [0], [1], [0, 0, 1, 1], [], []>} : vector<16x32xf32>, vector<32x64xf32>, vector<16x64xf32> -> vector<16x64xf32>
    %92 = vector.broadcast %8 : vector<1x64xf32> to vector<16x64xf32>
    %93 = arith.addf %91, %92 : vector<16x64xf32>
    %cst_32 = arith.constant 1.702000e+00 : f32
    %94 = vector.broadcast %cst_32 : f32 to vector<16x64xf32>
    %95 = arith.mulf %94, %93 : vector<16x64xf32>
    %96 = arith.negf %95 : vector<16x64xf32>
    %97 = math.exp %96 : vector<16x64xf32>
    %cst_33 = arith.constant 1.000000e+00 : f32
    %98 = vector.broadcast %cst_33 : f32 to vector<16x64xf32>
    %99 = arith.addf %98, %97 : vector<16x64xf32>
    %100 = arith.divf %98, %99 : vector<16x64xf32>
    %101 = arith.mulf %93, %100 : vector<16x64xf32>
    %cst_34 = arith.constant dense<0.000000e+00> : vector<16x32xf32>
    %102 = tpu.matmul %101, %4, %cst_34 {dimension_numbers = #tpu.dot_dimension_numbers<[1], [0], [0], [1], [0, 0, 1, 1], [], []>} : vector<16x64xf32>, vector<64x32xf32>, vector<16x32xf32> -> vector<16x32xf32>
    %103 = vector.broadcast %9 : vector<1x32xf32> to vector<16x32xf32>
    %104 = arith.addf %102, %103 : vector<16x32xf32>
    %105 = arith.addf %68, %104 : vector<16x32xf32>
    %c0_35 = arith.constant 0 : index
    %c0_36 = arith.constant 0 : index
    %106 = vector.load %arg2[%c0_35, %c0_36] : memref<16x32xf32, #tpu.memory_space<vmem>>, vector<16x32xf32>
    tpu.vector_store %arg2[%c0_35, %c0_36], %105 {strides = array<i32>} : memref<16x32xf32, #tpu.memory_space<vmem>>, vector<16x32xf32>,
    return
  }
}

</mosaic_0001>

<bundles_post_ra>
// kernel: tpu_custom_call.1
= control target key start
LH: loop header
LB: loop body
LE: loop exit
PB: predicated region body
PF: predicated region fallthrough
CT: control target
= control target key end

     0   :  { %7 = vsyncpa [#allocation3], 0  ;;  %s1401_s0 = inlined_call_operand.hbm [shape: f32[16,32], index: 0, kind: input, shape index: {}]   ;;  %s1402_s1 = inlined_call_operand.hbm [shape: f32[136,128], index: 1, kind: input, shape index: {}]   ;;  %s1403_s2 = inlined_call_operand.hbm [shape: f32[16,32], index: 2, kind: output, shape index: {}]  }
   0x1   :  { %8 = vsyncpa [#allocation6], 0 }
   0x2   :  { %9 = vsyncpa [#allocation4], 0  ;;  %s14_s11 = sshll.u32 %s1401_s0, 4  ;;  %s1083_s12 = smov [#allocation2]   ;;  %s15_s11 = int_to_ptr.hbm [resolvable:$true] %s14_s11 }
   0x3   :  { %s16_s13 = sshll.u32 %s1083_s12, 4  ;;  %s27_s16 = sshll.u32 %s1402_s1, 4  ;;  %s17_s13 = int_to_ptr.vmem [resolvable:$true] %s16_s13  ;;  %s28_s16 = int_to_ptr.hbm [resolvable:$true] %s27_s16 }
   0x4   :  { %s1084_s17 = smov 128   ;;  %s1085_s18 = smov 8  }
   0x5   :  { %22 = dma.hbm_to_vmem [thread:$0]  %s15_s11, 256, %s17_s13, [#allocation3], %s1084_s17, %s1084_s17, %s1085_s18  }
   0x6   :  { %s1086_s19 = smov [#allocation5]  }
   0x7   :  { %s29_s20 = sshll.u32 %s1086_s19, 4  ;;  %s30_s20 = int_to_ptr.vmem [resolvable:$true] %s29_s20 }
   0x8   :  { %35 = dma.hbm_to_vmem [thread:$0]  %s28_s16, 2176, %s30_s20, [#allocation6], %s1084_s17, %s1084_s17, %s1085_s18  }
   0x9   :  { %1077 = dma.done.wait [#allocation3], 256  }
   0xa   :  { %1078 = vsyncadd [#allocation3], 4294967040 }
   0xb   :  { %1079 = dma.done.wait [#allocation6], 2176  }
   0xc   :  { %1080 = vsyncadd [#allocation6], 4294965120  ;;  %vm70_vm0 = vcmask 261120   ;;  %v1125_v0 = vld [vmem:[#allocation2] sm:$0xff]  ;;  %v1129_v2 = vld [vmem:[#allocation2 + $0x8] sm:$0xff]  ;;  %v1087_v4 = vmov 32.0  }
   0xd   :  { %v71_v1 = vsel %vm70_vm0, %v1125_v0, 0.0  ;;  %v74_v3 = vsel %vm70_vm0, %v1129_v2, 0.0  ;;  %955 = vrcp.f32 %v1087_v4  ;;  %v1141_v21 = vld [vmem:[#allocation5 + $0x18] sm:$0xff]  ;;  %v1144_v22 = vld [vmem:[#allocation5 + $0x10] sm:$0xff]  ;;  %v1147_v23 = vld [vmem:[#allocation5 + $0x8] sm:$0xff]  ;;  %s1088_s0 = smov 80  }
   0xe   :  { %72 = vadd.xlane.f32.xlu0 %v71_v1  ;;  %147 = vmatpush.msra.mxu0 %v1141_v21  ;;  %v1150_v24 = vld [vmem:[#allocation5] sm:$0xff]  ;;  %v917_v25 = vpack.i.bf16 %v1144_v22, %v1141_v21  ;;  %s1089_s1 = smov 56   ;;  %s1090_s21 = smov 104   ;;  %vm188_vm8 = vcmask 64512   ;;  %vm262_vm9 = vcmask 523264  }
   0xf   :  { %v922_v26 = vpack.i.bf16 %v1150_v24, %v1147_v23  ;;  %v947_v41 = vld [vmem:[#allocation5 + $0x84] ss:$0 sm:$0xff]  ;;  %v948_v45 = vld [vmem:[#allocation5 + $0x85] ss:$0 sm:$0xff]  ;;  %v949_v55 = vld [vmem:[#allocation5 + $0x80] ss:$0 sm:$0xff] }
  0x10   :  { %148 = vmatpush.msra.mxu0 %v1144_v22  ;;  %s1091_s22 = smov 120   ;;  %s1092_s23 = smov 112  }
  0x11   :  { %s1093_s24 = smov 32   ;;  %s1094_s25 = smov 16  }
  0x12   :  { %149 = vmatpush.msra.mxu0 %v1147_v23  ;;  %s1095_s26 = smov 24   ;;  %s1096_s27 = smov 64  }
  0x13   :  { %v956_v5 = vpop.eup %955  ;;  %s1097_s28 = smov [#allocation7]   ;;  %s818_s4 = sshll.u32 %s1403_s2, 4  ;;  %s819_s4 = int_to_ptr.hbm [resolvable:$true] %s818_s4 }
  0x14   :  { %v78_v6 = vmul.f32 32.0, %v956_v5  ;;  %vm82_vm1 = vweird.f32 %v956_v5  ;;  %150 = vmatpush.msra.mxu0 %v1150_v24  ;;  %s816_s29 = sshll.u32 %s1097_s28, 4  ;;  %s817_s29 = int_to_ptr.vmem [resolvable:$true] %s816_s29 }
  0x16   :  { %75 = vadd.xlane.f32.xlu0 %v74_v3  ;;  %v79_v7 = vsub.f32 1.0, %v78_v6 }
  0x18   :  { %v80_v8 = vmul.f32 %v956_v5, %v79_v7 }
  0x1a   :  { %v81_v9 = vadd.f32 %v956_v5, %v80_v8 }
  0x1c   :  { %v1133_v10 = vsel %vm82_vm1, %v956_v5, %v81_v9 }
  0x81   :  { %v73_v11 = vpop.xlane.xlu0 %72 }
  0x82   :  { %v84_v12 = vmul.f32 %v1133_v10, %v73_v11 }
  0x84   :  { %v86_v13 = vsub.f32 %v1125_v0, %v84_v12 }
  0x86   :  { %v88_v14 = vmul.f32 %v86_v13, %v86_v13 }
  0x88   :  { %v90_v15 = vsel %vm70_vm0, %v88_v14, 0.0  ;;  %v1225_v14 = vld [vmem:[#allocation5 + $0x28] sm:$0xff] }
  0x89   :  { %91 = vadd.xlane.f32.xlu1 %v90_v15  ;;  %v76_v16 = vpop.xlane.xlu0 %75 }
  0x8a   :  { %v85_v17 = vmul.f32 %v1133_v10, %v76_v16  ;;  %v1229_v16 = vld [vmem:[#allocation5 + $0x38] sm:$0xff] }
  0x8c   :  { %v87_v18 = vsub.f32 %v1129_v2, %v85_v17  ;;  %v1231_v17 = vld [vmem:[#allocation5 + $0x30] sm:$0xff] }
  0x8e   :  { %v89_v19 = vmul.f32 %v87_v18, %v87_v18 }
  0x90   :  { %v93_v20 = vsel %vm70_vm0, %v89_v19, 0.0  ;;  %v1235_v19 = vld [vmem:[#allocation5 + $0x40] sm:$0xff] }
  0x91   :  { %94 = vadd.xlane.f32.xlu1 %v93_v20  ;;  %v1237_v20 = vld [vmem:[#allocation5 + $0x48] sm:$0xff] }
  0xfc   :  { %v92_v27 = vpop.xlane.xlu1 %91 }
  0xfd   :  { %v96_v28 = vmul.f32 %v92_v27, %v1133_v10  ;;  %v932_v27 = vpack.i.bf16 %v1235_v19, %v1237_v20 }
  0xff   :  { %v98_v29 = vadd.f32 1e-05, %v96_v28  ;;  %v1241_v28 = vld [vmem:[#allocation5 + $0x50] sm:$0xff] }
 0x101   :  { %957 = vrsqrt.f32 %v98_v29  ;;  %vm106_vm3 = vweird.f32 %v98_v29 }
 0x104   :  { %v95_v30 = vpop.xlane.xlu1 %94 }
 0x105   :  { %v97_v31 = vmul.f32 %v95_v30, %v1133_v10 }
 0x107   :  { %v958_v32 = vpop.eup %957  ;;  %v99_v33 = vadd.f32 1e-05, %v97_v31 }
 0x108   :  { %v101_v34 = vmul.f32 %v958_v32, %v98_v29  ;;  %vm107_vm2 = vweird.f32 %v958_v32  ;;  %v1243_v29 = vld [vmem:[#allocation5 + $0x58] sm:$0xff] }
 0x109   :  { %959 = vrsqrt.f32 %v99_v33  ;;  %vm108_vm4 = vmor %vm106_vm3, %vm107_vm2  ;;  %vm116_vm6 = vweird.f32 %v99_v33  ;;  %v927_v30 = vpack.i.bf16 %v1241_v28, %v1243_v29 }
 0x10a   :  { %v102_v35 = vmul.f32 %v958_v32, %v101_v34 }
 0x10c   :  { %v103_v36 = vmul.f32 0.5, %v102_v35 }
 0x10e   :  { %v104_v37 = vsub.f32 1.5, %v103_v36 }
 0x10f   :  { %v960_v38 = vpop.eup %959 }
 0x110   :  { %v105_v39 = vmul.f32 %v958_v32, %v104_v37  ;;  %v111_v40 = vmul.f32 %v960_v38, %v99_v33  ;;  %vm117_vm5 = vweird.f32 %v960_v38 }
 0x111   :  { %vm118_vm7 = vmor %vm116_vm6, %vm117_vm5 }
 0x112   :  { %v109_v42 = vsel %vm108_vm4, %v958_v32, %v105_v39  ;;  %v112_v43 = vmul.f32 %v960_v38, %v111_v40 }
 0x113   :  { %v120_v44 = vmul.f32 %v109_v42, %v86_v13  ;;  %v1223_v13 = vld [vmem:[#allocation5 + $0x20] sm:$0xff] }
 0x114   :  { %v113_v46 = vmul.f32 0.5, %v112_v43  ;;  %v942_v15 = vpack.i.bf16 %v1223_v13, %v1225_v14 }
 0x115   :  { %v123_v47 = vmul.f32 %v947_v41, %v120_v44 }
 0x116   :  { %v114_v48 = vsub.f32 1.5, %v113_v46 }
 0x117   :  { %v126_v49 = vadd.f32 %v948_v45, %v123_v47 }
 0x118   :  { %v115_v50 = vmul.f32 %v960_v38, %v114_v48 }
 0x119   :  { %832 = vmatmul.msk.f32.vlgmr.msra.gmra.mxu0 %vm70_vm0, %v126_v49 }
 0x11a   :  { %v119_v51 = vsel %vm118_vm7, %v960_v38, %v115_v50 }
 0x11b   :  { %v121_v52 = vmul.f32 %v119_v51, %v87_v18  ;;  %v937_v18 = vpack.i.bf16 %v1231_v17, %v1229_v16 }
 0x11d   :  { %v124_v53 = vmul.f32 %v947_v41, %v121_v52 }
 0x11f   :  { %v127_v54 = vadd.f32 %v948_v45, %v124_v53 }
 0x121   :  { %833 = vmatmul.msk.f32.gmra.mxu0 %vm70_vm0, %v127_v54 }
 0x196   :  { %v152_v56 = vpop.f32.mrf.mxu0 }
 0x197   :  { %v1161_v57 = vadd.f32 %v949_v55, %v152_v56 }
 0x199   :  { %164 = vrot.lane.b32.xlu1 %v1161_v57, %s1088_s0 }
 0x19e   :  { %v155_v58 = vpop.f32.mrf.mxu0 }
 0x19f   :  { %v1164_v59 = vadd.f32 %v949_v55, %v155_v58 }
 0x1a1   :  { %166 = vrot.lane.b32.xlu0 %v1164_v59, %s1088_s0  ;;  %170 = vrot.lane.b32.xlu2 %v1164_v59, %s1089_s1  ;;  %v912_v58 = vpack.i.bf16 %v1161_v57, %v1164_v59 }
 0x1a9   :  { %168 = vrot.lane.b32.xlu2 %v1161_v57, %s1089_s1 }
 0x1b1   :  { %162 = vrot.lane.b32.xlu2 %v1164_v59, %s1090_s21 }
 0x1b9   :  { %160 = vrot.lane.b32.xlu2 %v1161_v57, %s1090_s21 }
 0x1fb   :  { %v1171_v60 = vpop.permute.xlu2 %170 }
 0x1fc   :  { %186 = vrot.lane.b32.xlu2 %v1171_v60, %s1091_s22 }
 0x203   :  { %v1174_v61 = vpop.permute.xlu2 %168 }
 0x204   :  { %184 = vrot.lane.b32.xlu0 %v1174_v61, %s1091_s22  ;;  %v897_v53 = vpack.i.bf16 %v1174_v61, %v1171_v60 }
 0x20b   :  { %v1177_v62 = vpop.permute.xlu2 %162  ;;  %v1179_v63 = vpop.permute.xlu1 %164 }
 0x20c   :  { %178 = vrot.lane.b32.xlu0 %v1177_v62, %s1091_s22  ;;  %180 = vrot.lane.b32.xlu1 %v1179_v63, %s1091_s22 }
 0x213   :  { %v1183_v1 = vpop.permute.xlu0 %166  ;;  %v1188_v3 = vpop.permute.xlu2 %160 }
 0x214   :  { %182 = vrot.lane.b32.xlu2 %v1183_v1, %s1091_s22  ;;  %172 = vrot.lane.b32.xlu0 %v1161_v57, %s1091_s22  ;;  %v902_v52 = vpack.i.bf16 %v1179_v63, %v1183_v1 }
 0x215   :  { %174 = vrot.lane.b32.xlu1 %v1164_v59, %s1091_s22 }
 0x21c   :  { %176 = vrot.lane.b32.xlu2 %v1188_v3, %s1091_s22 }
 0x256   :  { %v187_v4 = vpop.permute.xlu2 %186 }
 0x257   :  { %834 = vmatpush.xpose.msk.msrb.mxu0 %vm188_vm8, %v187_v4  ;;  %866 = vmatpush.xpose.msk.msra.mxu1 %vm188_vm8, %v187_v4 }
 0x26e   :  { %v183_v6 = vpop.permute.xlu2 %182 }
 0x276   :  { %v185_v5 = vpop.permute.xlu0 %184  ;;  %v177_v9 = vpop.permute.xlu2 %176 }
 0x277   :  { %835 = vmatpush.xpose.msk.msrb.mxu0 %vm188_vm8, %v185_v5  ;;  %867 = vmatpush.xpose.msk.msra.mxu1 %vm188_vm8, %v185_v5 }
 0x27b   :  { %836 = vmatpush.xpose.msk.msrb.mxu0 %vm188_vm8, %v183_v6  ;;  %868 = vmatpush.xpose.msk.msra.mxu1 %vm188_vm8, %v183_v6 }
 0x27e   :  { %v181_v7 = vpop.permute.xlu1 %180  ;;  %v179_v8 = vpop.permute.xlu0 %178 }
 0x27f   :  { %837 = vmatpush.xpose.msk.msrb.mxu0 %vm188_vm8, %v181_v7  ;;  %869 = vmatpush.xpose.msk.msra.mxu1 %vm188_vm8, %v181_v7 }
 0x283   :  { %838 = vmatpush.xpose.msk.msrb.mxu0 %vm188_vm8, %v179_v8  ;;  %870 = vmatpush.xpose.msk.msra.mxu1 %vm188_vm8, %v179_v8 }
 0x286   :  { %v173_v12 = vpop.permute.xlu0 %172 }
 0x287   :  { %839 = vmatpush.xpose.msk.msrb.mxu0 %vm188_vm8, %v177_v9  ;;  %871 = vmatpush.xpose.msk.msra.mxu1 %vm188_vm8, %v177_v9  ;;  %v175_v11 = vpop.permute.xlu1 %174 }
 0x28b   :  { %840 = vmatpush.xpose.msk.msrb.mxu0 %vm188_vm8, %v175_v11  ;;  %872 = vmatpush.xpose.msk.msra.mxu1 %vm188_vm8, %v175_v11 }
 0x28f   :  { %841 = vmatpush.xpose.msk.msrb.mxu0 %vm188_vm8, %v173_v12  ;;  %873 = vmatpush.xpose.msk.msra.mxu1 %vm188_vm8, %v173_v12 }
 0x292   :  { %842 = vmatmul.msk.f32.vlgmr.msrb.gmra.mxu0 %vm188_vm8, %v1161_v57  ;;  %845 = vmatmul.msk.f32.vlgmr.msra.gmra.mxu1 %vm188_vm8, %v1177_v62 }
 0x29a   :  { %843 = vmatmul.msk.f32.gmra.mxu0 %vm188_vm8, %v1164_v59  ;;  %846 = vmatmul.msk.f32.gmra.mxu1 %vm188_vm8, %v1179_v63 }
 0x2a2   :  { %844 = vmatmul.msk.f32.gmra.mxu0 %vm188_vm8, %v1188_v3  ;;  %847 = vmatmul.msk.f32.gmra.mxu1 %vm188_vm8, %v1183_v1 }
 0x2aa   :  { %848 = vmatmul.msk.f32.gmra.mxu1 %vm188_vm8, %v1174_v61 }
 0x2b2   :  { %849 = vmatmul.msk.f32.gmra.mxu1 %vm188_vm8, %v1171_v60 }
 0x30f   :  { %v238_v31 = vpop.f32.mrf.mxu0  ;;  %v247_v32 = vpop.f32.mrf.mxu1 }
 0x310   :  { %v239_v33 = vadd.f32 %v238_v31, %v1223_v13  ;;  %v248_v35 = vadd.f32 %v247_v32, %v1229_v16 }
 0x312   :  { %v263_v34 = vsel %vm262_vm9, %v239_v33, -inf  ;;  %v272_v40 = vsel %vm262_vm9, %v248_v35, -inf }
 0x313   :  { %264 = vmax.xlane.f32.xlu2 %v263_v34 }
 0x317   :  { %v241_v36 = vpop.f32.mrf.mxu0  ;;  %v250_v37 = vpop.f32.mrf.mxu1 }
 0x318   :  { %v242_v38 = vadd.f32 %v241_v36, %v1225_v14  ;;  %v1254_v41 = vadd.f32 %v250_v37, %v1235_v19 }
 0x31a   :  { %v266_v39 = vsel %vm262_vm9, %v242_v38, -inf  ;;  %v275_v46 = vsel %vm262_vm9, %v1254_v41, -inf }
 0x31b   :  { %267 = vmax.xlane.f32.xlu1 %v266_v39  ;;  %273 = vmax.xlane.f32.xlu2 %v272_v40 }
 0x31f   :  { %v244_v42 = vpop.f32.mrf.mxu0  ;;  %v253_v43 = vpop.f32.mrf.mxu1 }
 0x320   :  { %v245_v44 = vadd.f32 %v244_v42, %v1231_v17  ;;  %v254_v47 = vadd.f32 %v253_v43, %v1237_v20 }
 0x322   :  { %v269_v45 = vsel %vm262_vm9, %v245_v44, -inf  ;;  %v278_v50 = vsel %vm262_vm9, %v254_v47, -inf }
 0x323   :  { %270 = vmax.xlane.f32.xlu0 %v269_v45  ;;  %276 = vmax.xlane.f32.xlu1 %v275_v46 }
 0x327   :  { %v256_v48 = vpop.f32.mrf.mxu1 }
 0x328   :  { %v257_v49 = vadd.f32 %v256_v48, %v1241_v28  ;;  %v58_v28 = vld [vmem:[#allocation5 + $0x60] sm:$0xff] }
 0x32a   :  { %v281_v51 = vsel %vm262_vm9, %v257_v49, -inf }
 0x32b   :  { %279 = vmax.xlane.f32.xlu0 %v278_v50  ;;  %282 = vmax.xlane.f32.xlu2 %v281_v51  ;;  %v907_v51 = vpack.i.bf16 %v1188_v3, %v1177_v62 }
 0x32f   :  { %v259_v54 = vpop.f32.mrf.mxu1 }
 0x330   :  { %v1271_v55 = vadd.f32 %v259_v54, %v1243_v29 }
 0x332   :  { %v284_v56 = vsel %vm262_vm9, %v1271_v55, -inf }
 0x33f   :  { %903 = vrot.lane.b32.xlu0 %v902_v52, %s1092_s23 }
 0x343   :  { %898 = vrot.lane.b32.xlu2 %v897_v53, %s1092_s23 }
 0x369   :  { %285 = vmax.xlane.f32.xlu0 %v284_v56 }
 0x37d   :  { %913 = vrot.lane.b32.xlu0 %v912_v58, %s1092_s23 }
 0x386   :  { %v265_v63 = vpop.xlane.xlu2 %264 }
 0x387   :  { %v287_v1 = vsub.f32 %v239_v33, %v265_v63 }
 0x389   :  { %v295_v4 = vmul.f32 1.442695, %v287_v1 }
 0x38b   :  { %961 = vpow2.f32 %v295_v4 }
 0x38e   :  { %v268_v60 = vpop.xlane.xlu1 %267  ;;  %v274_v7 = vpop.xlane.xlu2 %273 }
 0x38f   :  { %v288_v61 = vsub.f32 %v242_v38, %v268_v60  ;;  %v290_v9 = vsub.f32 %v248_v35, %v274_v7 }
 0x391   :  { %v1278_v5 = vpop.eup %961  ;;  %v297_v6 = vmul.f32 1.442695, %v288_v61  ;;  %v301_v12 = vmul.f32 1.442695, %v290_v9 }
 0x392   :  { %v311_v8 = vsel %vm262_vm9, %v1278_v5, 0.0 }
 0x393   :  { %963 = vpow2.f32 %v297_v6  ;;  %312 = vadd.xlane.f32.xlu1 %v311_v8 }
 0x396   :  { %v271_v11 = vpop.xlane.xlu0 %270  ;;  %v277_v56 = vpop.xlane.xlu1 %276 }
 0x397   :  { %v289_v57 = vsub.f32 %v245_v44, %v271_v11  ;;  %v291_v58 = vsub.f32 %v1254_v41, %v277_v56 }
 0x399   :  { %v1282_v59 = vpop.eup %963  ;;  %v299_v31 = vmul.f32 1.442695, %v289_v57  ;;  %v303_v63 = vmul.f32 1.442695, %v291_v58 }
 0x39a   :  { %v314_v32 = vsel %vm262_vm9, %v1282_v59, 0.0 }
 0x39b   :  { %965 = vpow2.f32 %v299_v31  ;;  %315 = vadd.xlane.f32.xlu1 %v314_v32 }
 0x39c   :  { %967 = vpow2.f32 %v301_v12 }
 0x39e   :  { %v280_v33 = vpop.xlane.xlu0 %279  ;;  %v283_v34 = vpop.xlane.xlu2 %282 }
 0x39f   :  { %v292_v36 = vsub.f32 %v254_v47, %v280_v33  ;;  %v293_v39 = vsub.f32 %v257_v49, %v283_v34 }
 0x3a1   :  { %v1286_v37 = vpop.eup %965  ;;  %v305_v38 = vmul.f32 1.442695, %v292_v36  ;;  %v307_v42 = vmul.f32 1.442695, %v293_v39 }
 0x3a2   :  { %v317_v35 = vsel %vm262_vm9, %v1286_v37, 0.0  ;;  %v1290_v40 = vpop.eup %967 }
 0x3a3   :  { %969 = vpow2.f32 %v305_v38  ;;  %318 = vadd.xlane.f32.xlu2 %v317_v35  ;;  %v320_v44 = vsel %vm262_vm9, %v1290_v40, 0.0 }
 0x3a4   :  { %971 = vpow2.f32 %v307_v42 }
 0x3a5   :  { %973 = vpow2.f32 %v303_v63 }
 0x3a6   :  { %v899_v43 = vpop.permute.xlu2 %898 }
 0x3a7   :  { %321 = vadd.xlane.f32.xlu0 %v320_v44  ;;  %v900_v45 = vunpack.i.l.bf16 %v899_v43  ;;  %v901_v47 = vunpack.i.h.bf16 %v899_v43 }
 0x3a9   :  { %v1294_v46 = vpop.eup %969  ;;  %511 = vmatpush.msra.mxu2 %v900_v45  ;;  %874 = vmatpush.msra.mxu3 %v900_v45 }
 0x3aa   :  { %v326_v48 = vsel %vm262_vm9, %v1294_v46, 0.0  ;;  %v1298_v49 = vpop.eup %971 }
 0x3ab   :  { %327 = vadd.xlane.f32.xlu2 %v326_v48  ;;  %512 = vmatpush.msra.mxu2 %v901_v47  ;;  %v329_v52 = vsel %vm262_vm9, %v1298_v49, 0.0  ;;  %v1306_v1 = vpop.eup %973 }
 0x3ac   :  { %875 = vmatpush.msra.mxu3 %v901_v47  ;;  %v323_v4 = vsel %vm262_vm9, %v1306_v1, 0.0 }
 0x3b1   :  { %v904_v50 = vpop.permute.xlu0 %903 }
 0x3b2   :  { %v905_v53 = vunpack.i.l.bf16 %v904_v50  ;;  %v906_v54 = vunpack.i.h.bf16 %v904_v50 }
 0x3b3   :  { %330 = vadd.xlane.f32.xlu2 %v329_v52 }
 0x3b4   :  { %908 = vrot.lane.b32.xlu1 %v907_v51, %s1092_s23  ;;  %513 = vmatpush.msra.mxu2 %v905_v53 }
 0x3b5   :  { %876 = vmatpush.msra.mxu3 %v905_v53 }
 0x3b6   :  { %514 = vmatpush.msra.mxu2 %v906_v54 }
 0x3b7   :  { %877 = vmatpush.msra.mxu3 %v906_v54 }
 0x3dc   :  { %v286_v62 = vpop.xlane.xlu0 %285 }
 0x3dd   :  { %v294_v3 = vsub.f32 %v1271_v55, %v286_v62 }
 0x3de   :  { %324 = vadd.xlane.f32.xlu1 %v323_v4 }
 0x3df   :  { %v309_v60 = vmul.f32 1.442695, %v294_v3 }
 0x3e1   :  { %975 = vpow2.f32 %v309_v60 }
 0x3e7   :  { %v1311_v61 = vpop.eup %975 }
 0x3e8   :  { %v332_v6 = vsel %vm262_vm9, %v1311_v61, 0.0 }
 0x3e9   :  { %333 = vadd.xlane.f32.xlu0 %v332_v6 }
 0x3ef   :  { %v914_v11 = vpop.permute.xlu0 %913 }
 0x3f0   :  { %v915_v51 = vunpack.i.l.bf16 %v914_v11  ;;  %v916_v63 = vunpack.i.h.bf16 %v914_v11 }
 0x3f7   :  { %918 = vrot.lane.b32.xlu1 %v917_v25, %s1093_s24 }
 0x3fd   :  { %923 = vrot.lane.b32.xlu0 %v922_v26, %s1093_s24 }
 0x406   :  { %v313_v41 = vpop.xlane.xlu1 %312 }
 0x407   :  { %977 = vrcp.f32 %v313_v41  ;;  %v346_v39 = vand.u32 2147483648, %v313_v41  ;;  %vm340_vm11 = vweird.f32 %v313_v41  ;;  %v344_v42 = vand.u32 2147483647, %v313_v41 }
 0x409   :  { %v347_v48 = vor.u32 1.1754944e-38, %v346_v39  ;;  %vm345_vm13 = vcmp.eq.f32.partialorder %v344_v42, 8.507059e+37 }
 0x40d   :  { %v978_v8 = vpop.eup %977 }
 0x40e   :  { %v316_v7 = vpop.xlane.xlu1 %315  ;;  %v336_v9 = vmul.f32 %v978_v8, %v313_v41  ;;  %vm341_vm10 = vweird.f32 %v978_v8 }
 0x40f   :  { %979 = vrcp.f32 %v316_v7  ;;  %vm342_vm12 = vmor %vm340_vm11, %vm341_vm10  ;;  %v360_v58 = vand.u32 2147483648, %v316_v7  ;;  %vm354_vm15 = vweird.f32 %v316_v7  ;;  %v358_v3 = vand.u32 2147483647, %v316_v7 }
 0x410   :  { %v337_v55 = vsub.f32 1.0, %v336_v9 }
 0x411   :  { %v361_v41 = vor.u32 1.1754944e-38, %v360_v58  ;;  %vm359_vm2 = vcmp.eq.f32.partialorder %v358_v3, 8.507059e+37 }
 0x412   :  { %v338_v31 = vmul.f32 %v978_v8, %v337_v55 }
 0x414   :  { %v339_v36 = vadd.f32 %v978_v8, %v338_v31 }
 0x415   :  { %v980_v12 = vpop.eup %979 }
 0x416   :  { %v319_v57 = vpop.xlane.xlu2 %318  ;;  %v350_v32 = vmul.f32 %v980_v12, %v316_v7  ;;  %v343_v47 = vsel %vm342_vm12, %v978_v8, %v339_v36  ;;  %vm355_vm14 = vweird.f32 %v980_v12 }
 0x417   :  { %981 = vrcp.f32 %v319_v57  ;;  %v348_v52 = vsel %vm345_vm13, %v347_v48, %v343_v47  ;;  %vm356_vm1 = vmor %vm354_vm15, %vm355_vm14  ;;  %v374_v11 = vand.u32 2147483648, %v319_v57  ;;  %vm368_vm4 = vweird.f32 %v319_v57 }
 0x418   :  { %v351_v33 = vsub.f32 1.0, %v350_v32  ;;  %v447_v62 = vmul.f32 %v1278_v5, %v348_v52  ;;  %v372_v7 = vand.u32 2147483647, %v319_v57 }
 0x41a   :  { %v1315_v34 = vpop.xlane.xlu0 %321  ;;  %v352_v44 = vmul.f32 %v980_v12, %v351_v33  ;;  %v375_v33 = vor.u32 1.1754944e-38, %v374_v11  ;;  %vm373_vm6 = vcmp.eq.f32.partialorder %v372_v7, 8.507059e+37 }
 0x41b   :  { %983 = vrcp.f32 %v1315_v34  ;;  %v388_v39 = vand.u32 2147483648, %v1315_v34  ;;  %vm382_vm10 = vweird.f32 %v1315_v34  ;;  %v386_v42 = vand.u32 2147483647, %v1315_v34 }
 0x41c   :  { %v353_v54 = vadd.f32 %v980_v12, %v352_v44 }
 0x41d   :  { %v982_v38 = vpop.eup %981  ;;  %vm387_vm12 = vcmp.eq.f32.partialorder %v386_v42, 8.507059e+37 }
 0x41e   :  { %v364_v45 = vmul.f32 %v982_v38, %v319_v57  ;;  %v357_v6 = vsel %vm356_vm1, %v980_v12, %v353_v54  ;;  %vm369_vm3 = vweird.f32 %v982_v38  ;;  %v389_v57 = vor.u32 1.1754944e-38, %v388_v39 }
 0x41f   :  { %v362_v8 = vsel %vm359_vm2, %v361_v41, %v357_v6  ;;  %vm370_vm5 = vmor %vm368_vm4, %vm369_vm3 }
 0x420   :  { %v365_v53 = vsub.f32 1.0, %v364_v45  ;;  %v448_v5 = vmul.f32 %v1282_v59, %v362_v8 }
 0x421   :  { %v984_v56 = vpop.eup %983 }
 0x422   :  { %v366_v4 = vmul.f32 %v982_v38, %v365_v53  ;;  %v378_v60 = vmul.f32 %v984_v56, %v1315_v34  ;;  %vm383_vm7 = vweird.f32 %v984_v56 }
 0x423   :  { %vm384_vm11 = vmor %vm382_vm10, %vm383_vm7 }
 0x424   :  { %v379_v9 = vsub.f32 1.0, %v378_v60  ;;  %v367_v55 = vadd.f32 %v982_v38, %v366_v4 }
 0x426   :  { %v909_v35 = vpop.permute.xlu1 %908  ;;  %v380_v31 = vmul.f32 %v984_v56, %v379_v9  ;;  %v371_v32 = vsel %vm370_vm5, %v982_v38, %v367_v55 }
 0x427   :  { %v910_v43 = vunpack.i.l.bf16 %v909_v35  ;;  %v911_v50 = vunpack.i.h.bf16 %v909_v35  ;;  %v376_v36 = vsel %vm373_vm6, %v375_v33, %v371_v32 }
 0x428   :  { %v381_v12 = vadd.f32 %v984_v56, %v380_v31  ;;  %v449_v35 = vmul.f32 %v1286_v37, %v376_v36 }
 0x429   :  { %515 = vmatpush.msra.mxu2 %v910_v43  ;;  %878 = vmatpush.msra.mxu3 %v910_v43  ;;  %v328_v43 = vpop.xlane.xlu2 %327 }
 0x42a   :  { %v385_v59 = vsel %vm384_vm11, %v984_v56, %v381_v12  ;;  %985 = vrcp.f32 %v328_v43  ;;  %vm410_vm3 = vweird.f32 %v328_v43  ;;  %v414_v6 = vand.u32 2147483647, %v328_v43 }
 0x42b   :  { %516 = vmatpush.msra.mxu2 %v911_v50  ;;  %879 = vmatpush.msra.mxu3 %v911_v50  ;;  %v390_v38 = vsel %vm387_vm12, %v389_v57, %v385_v59 }
 0x42c   :  { %v450_v44 = vmul.f32 %v1290_v40, %v390_v38  ;;  %vm415_vm5 = vcmp.eq.f32.partialorder %v414_v6, 8.507059e+37  ;;  %v950_v6 = vld [vmem:[#allocation5 + $0x81] ss:$0 sm:$0xff] }
 0x42d   :  { %517 = vmatpush.msra.mxu2 %v915_v51  ;;  %880 = vmatpush.msra.mxu3 %v915_v51 }
 0x42f   :  { %518 = vmatpush.msra.mxu2 %v916_v63  ;;  %881 = vmatpush.msra.mxu3 %v916_v63 }
 0x430   :  { %850 = vmatmul.msk.f32.vlgmr.msra.gmra.mxu2 %vm262_vm9, %v447_v62  ;;  %v986_v34 = vpop.eup %985  ;;  %v416_v62 = vand.u32 2147483648, %v328_v43 }
 0x431   :  { %v1336_v37 = vpop.xlane.xlu2 %330  ;;  %v406_v40 = vmul.f32 %v986_v34, %v328_v43  ;;  %vm411_vm1 = vweird.f32 %v986_v34 }
 0x432   :  { %vm412_vm4 = vmor %vm410_vm3, %vm411_vm1  ;;  %v417_v55 = vor.u32 1.1754944e-38, %v416_v62  ;;  %v430_v36 = vand.u32 2147483648, %v1336_v37  ;;  %vm424_vm11 = vweird.f32 %v1336_v37  ;;  %vm570_vm1 = vcmask 130048  }
 0x433   :  { %v407_v48 = vsub.f32 1.0, %v406_v40 }
 0x434   :  { %v431_v38 = vor.u32 1.1754944e-38, %v430_v36 }
 0x435   :  { %v408_v53 = vmul.f32 %v986_v34, %v407_v48 }
 0x437   :  { %v409_v63 = vadd.f32 %v986_v34, %v408_v53 }
 0x438   :  { %851 = vmatmul.msk.f32.gmra.mxu2 %vm262_vm9, %v448_v5 }
 0x439   :  { %v413_v9 = vsel %vm412_vm4, %v986_v34, %v409_v63 }
 0x43a   :  { %v418_v31 = vsel %vm415_vm5, %v417_v55, %v413_v9 }
 0x43b   :  { %v452_v39 = vmul.f32 %v1294_v46, %v418_v31 }
 0x440   :  { %852 = vmatmul.msk.f32.gmra.mxu2 %vm262_vm9, %v449_v35  ;;  %v428_v35 = vand.u32 2147483647, %v1336_v37 }
 0x448   :  { %853 = vmatmul.msk.f32.gmra.mxu2 %vm262_vm9, %v450_v44 }
 0x451   :  { %v325_v45 = vpop.xlane.xlu1 %324 }
 0x452   :  { %987 = vrcp.f32 %v325_v45  ;;  %v402_v22 = vand.u32 2147483648, %v325_v45  ;;  %v400_v24 = vand.u32 2147483647, %v325_v45  ;;  %vm396_vm14 = vweird.f32 %v325_v45 }
 0x453   :  { %989 = vrcp.f32 %v1336_v37 }
 0x454   :  { %v403_v54 = vor.u32 1.1754944e-38, %v402_v22  ;;  %vm401_vm2 = vcmp.eq.f32.partialorder %v400_v24, 8.507059e+37 }
 0x458   :  { %v988_v47 = vpop.eup %987 }
 0x459   :  { %v990_v50 = vpop.eup %989  ;;  %v392_v51 = vmul.f32 %v988_v47, %v325_v45  ;;  %vm397_vm13 = vweird.f32 %v988_v47 }
 0x45a   :  { %v420_v21 = vmul.f32 %v990_v50, %v1336_v37  ;;  %vm398_vm15 = vmor %vm396_vm14, %vm397_vm13  ;;  %vm425_vm7 = vweird.f32 %v990_v50 }
 0x45b   :  { %v393_v52 = vsub.f32 1.0, %v392_v51  ;;  %vm426_vm14 = vmor %vm424_vm11, %vm425_vm7 }
 0x45c   :  { %v334_v25 = vpop.xlane.xlu0 %333  ;;  %v421_v56 = vsub.f32 1.0, %v420_v21 }
 0x45d   :  { %v394_v23 = vmul.f32 %v988_v47, %v393_v52  ;;  %991 = vrcp.f32 %v334_v25  ;;  %v444_v5 = vand.u32 2147483648, %v334_v25  ;;  %v442_v32 = vand.u32 2147483647, %v334_v25 }
 0x45e   :  { %v422_v8 = vmul.f32 %v990_v50, %v421_v56  ;;  %vm438_vm10 = vweird.f32 %v334_v25 }
 0x45f   :  { %v395_v26 = vadd.f32 %v988_v47, %v394_v23  ;;  %v445_v12 = vor.u32 1.1754944e-38, %v444_v5  ;;  %vm443_vm13 = vcmp.eq.f32.partialorder %v442_v32, 8.507059e+37 }
 0x460   :  { %v423_v33 = vadd.f32 %v990_v50, %v422_v8 }
 0x461   :  { %v399_v58 = vsel %vm398_vm15, %v988_v47, %v395_v26  ;;  %vm429_vm15 = vcmp.eq.f32.partialorder %v428_v35, 8.507059e+37 }
 0x462   :  { %v404_v3 = vsel %vm401_vm2, %v403_v54, %v399_v58  ;;  %v427_v57 = vsel %vm426_vm14, %v990_v50, %v423_v33  ;;  %vm573_vm2 = vcmask 195584  }
 0x463   :  { %v992_v4 = vpop.eup %991  ;;  %v451_v60 = vmul.f32 %v1306_v1, %v404_v3  ;;  %v432_v44 = vsel %vm429_vm15, %v431_v38, %v427_v57  ;;  %v60_v57 = vld [vmem:[#allocation5 + $0x70] sm:$0xff]  ;;  %v59_v38 = vld [vmem:[#allocation5 + $0x68] sm:$0xff] }
 0x464   :  { %v434_v41 = vmul.f32 %v992_v4, %v334_v25  ;;  %vm439_vm6 = vweird.f32 %v992_v4  ;;  %v453_v34 = vmul.f32 %v1298_v49, %v432_v44 }
 0x465   :  { %854 = vmatmul.msk.f32.gmra.mxu2 %vm262_vm9, %v451_v60  ;;  %vm440_vm12 = vmor %vm438_vm10, %vm439_vm6 }
 0x466   :  { %v435_v11 = vsub.f32 1.0, %v434_v41 }
 0x468   :  { %v436_v7 = vmul.f32 %v992_v4, %v435_v11 }
 0x469   :  { %v919_v49 = vpop.permute.xlu1 %918 }
 0x46a   :  { %v437_v1 = vadd.f32 %v992_v4, %v436_v7  ;;  %v920_v51 = vunpack.i.l.bf16 %v919_v49  ;;  %v921_v52 = vunpack.i.h.bf16 %v919_v49 }
 0x46c   :  { %v441_v42 = vsel %vm440_vm12, %v992_v4, %v437_v1  ;;  %611 = vmatpush.msrb.mxu3 %v920_v51 }
 0x46d   :  { %855 = vmatmul.msk.f32.gmra.mxu2 %vm262_vm9, %v452_v39  ;;  %v446_v59 = vsel %vm443_vm13, %v445_v12, %v441_v42 }
 0x46e   :  { %v454_v43 = vmul.f32 %v1311_v61, %v446_v59  ;;  %612 = vmatpush.msrb.mxu3 %v921_v52  ;;  %v61_v59 = vld [vmem:[#allocation5 + $0x78] sm:$0xff] }
 0x46f   :  { %v924_v53 = vpop.permute.xlu0 %923 }
 0x470   :  { %857 = vmatmul.msk.f32.vlgmr.msra.gmra.mxu3 %vm262_vm9, %v454_v43  ;;  %v925_v21 = vunpack.i.l.bf16 %v924_v53  ;;  %v926_v22 = vunpack.i.h.bf16 %v924_v53 }
 0x472   :  { %613 = vmatpush.msrb.mxu3 %v925_v21 }
 0x474   :  { %614 = vmatpush.msrb.mxu3 %v926_v22 }
 0x475   :  { %856 = vmatmul.msk.f32.gmra.mxu2 %vm262_vm9, %v453_v34 }
 0x476   :  { %693 = vmatpush.msra.mxu3 %v61_v59 }
 0x478   :  { %694 = vmatpush.msra.mxu3 %v60_v57 }
 0x47a   :  { %695 = vmatpush.msra.mxu3 %v59_v38 }
 0x47c   :  { %696 = vmatpush.msra.mxu3 %v58_v28 }
 0x4b3   :  { %v520_v46 = vpop.f32.mrf.mxu2 }
 0x4bb   :  { %v523_v37 = vpop.f32.mrf.mxu2 }
 0x4c3   :  { %v526_v45 = vpop.f32.mrf.mxu2 }
 0x4c4   :  { %546 = vrot.lane.b32.xlu2 %v526_v45, %s1085_s18 }
 0x4cb   :  { %v529_v40 = vpop.f32.mrf.mxu2 }
 0x4cc   :  { %548 = vrot.lane.b32.xlu2 %v529_v40, %s1085_s18 }
 0x4e8   :  { %v532_v47 = vpop.f32.mrf.mxu2 }
 0x4e9   :  { %554 = vrot.lane.b32.xlu1 %v532_v47, %s1094_s25  ;;  %v952_v47 = vld [vmem:[#allocation5 + $0x87] ss:$0 sm:$0xff] }
 0x4f0   :  { %v535_v61 = vpop.f32.mrf.mxu2 }
 0x4f1   :  { %556 = vrot.lane.b32.xlu1 %v535_v61, %s1094_s25 }
 0x4f3   :  { %v541_v50 = vpop.f32.mrf.mxu3 }
 0x4f8   :  { %v538_v48 = vpop.f32.mrf.mxu2 }
 0x4f9   :  { %562 = vrot.lane.b32.xlu0 %v538_v48, %s1095_s26 }
 0x501   :  { %564 = vrot.lane.b32.xlu0 %v541_v50, %s1095_s26 }
 0x51e   :  { %v547_v25 = vpop.permute.xlu2 %546 }
 0x51f   :  { %v568_v24 = vsel %vm188_vm8, %v520_v46, %v547_v25  ;;  %v951_v46 = vld [vmem:[#allocation5 + $0x86] ss:$0 sm:$0xff] }
 0x526   :  { %v549_v58 = vpop.permute.xlu2 %548 }
 0x527   :  { %v569_v62 = vsel %vm188_vm8, %v523_v37, %v549_v58 }
 0x55b   :  { %v555_v23 = vpop.permute.xlu1 %554 }
 0x55c   :  { %v571_v26 = vsel %vm570_vm1, %v568_v24, %v555_v23 }
 0x563   :  { %v557_v63 = vpop.permute.xlu1 %556 }
 0x564   :  { %v572_v3 = vsel %vm570_vm1, %v569_v62, %v557_v63  ;;  %v953_v62 = vld [vmem:[#allocation5 + $0x82] ss:$0 sm:$0xff] }
 0x56b   :  { %v563_v54 = vpop.permute.xlu0 %562 }
 0x56c   :  { %v574_v56 = vsel %vm573_vm2, %v571_v26, %v563_v54 }
 0x56d   :  { %858 = vmatmul.msk.f32.vlgmr.msrb.gmra.mxu3 %vm70_vm0, %v574_v56 }
 0x573   :  { %v565_v4 = vpop.permute.xlu0 %564 }
 0x574   :  { %v575_v60 = vsel %vm573_vm2, %v572_v3, %v565_v4 }
 0x575   :  { %859 = vmatmul.msk.f32.gmra.mxu3 %vm70_vm0, %v575_v60 }
 0x5f0   :  { %v616_v41 = vpop.f32.mrf.mxu3 }
 0x5f1   :  { %v617_v8 = vadd.f32 %v950_v6, %v616_v41 }
 0x5f3   :  { %v1358_v9 = vadd.f32 %v617_v8, %v1125_v0 }
 0x5f5   :  { %v624_v55 = vsel %vm70_vm0, %v1358_v9, 0.0 }
 0x5f6   :  { %625 = vadd.xlane.f32.xlu2 %v624_v55 }
 0x5f8   :  { %v619_v11 = vpop.f32.mrf.mxu3 }
 0x5f9   :  { %v620_v5 = vadd.f32 %v950_v6, %v619_v11 }
 0x5fb   :  { %v1363_v7 = vadd.f32 %v620_v5, %v1129_v2 }
 0x5fd   :  { %v627_v31 = vsel %vm70_vm0, %v1363_v7, 0.0 }
 0x5fe   :  { %628 = vadd.xlane.f32.xlu1 %v627_v31 }
 0x617   :  { %928 = vrot.lane.b32.xlu1 %v927_v30, %s1096_s27 }
 0x669   :  { %v626_v32 = vpop.xlane.xlu2 %625 }
 0x66a   :  { %v630_v33 = vmul.f32 %v626_v32, %v1133_v10 }
 0x66c   :  { %v632_v36 = vsub.f32 %v1358_v9, %v630_v33 }
 0x66e   :  { %v634_v0 = vmul.f32 %v632_v36, %v632_v36 }
 0x670   :  { %v636_v1 = vsel %vm70_vm0, %v634_v0, 0.0 }
 0x671   :  { %637 = vadd.xlane.f32.xlu0 %v636_v1  ;;  %v629_v12 = vpop.xlane.xlu1 %628 }
 0x672   :  { %v631_v39 = vmul.f32 %v629_v12, %v1133_v10 }
 0x674   :  { %v633_v35 = vsub.f32 %v1363_v7, %v631_v39 }
 0x676   :  { %v635_v2 = vmul.f32 %v633_v35, %v633_v35 }
 0x678   :  { %v639_v42 = vsel %vm70_vm0, %v635_v2, 0.0 }
 0x679   :  { %640 = vadd.xlane.f32.xlu2 %v639_v42 }
 0x685   :  { %933 = vrot.lane.b32.xlu0 %v932_v27, %s1096_s27 }
 0x689   :  { %v929_v22 = vpop.permute.xlu1 %928 }
 0x68a   :  { %v930_v25 = vunpack.i.l.bf16 %v929_v22  ;;  %v931_v23 = vunpack.i.h.bf16 %v929_v22 }
 0x68c   :  { %793 = vmatpush.msrb.mxu3 %v930_v25 }
 0x68d   :  { %943 = vrot.lane.b32.xlu0 %v942_v15, %s1096_s27 }
 0x68e   :  { %794 = vmatpush.msrb.mxu3 %v931_v23 }
 0x691   :  { %938 = vrot.lane.b32.xlu2 %v937_v18, %s1096_s27 }
 0x6e4   :  { %v638_v29 = vpop.xlane.xlu0 %637 }
 0x6e5   :  { %v642_v19 = vmul.f32 %v638_v29, %v1133_v10 }
 0x6e7   :  { %v644_v20 = vadd.f32 1e-05, %v642_v19 }
 0x6e9   :  { %993 = vrsqrt.f32 %v644_v20  ;;  %vm652_vm3 = vweird.f32 %v644_v20 }
 0x6ec   :  { %v641_v27 = vpop.xlane.xlu2 %640 }
 0x6ed   :  { %v643_v16 = vmul.f32 %v641_v27, %v1133_v10 }
 0x6ef   :  { %v994_v17 = vpop.eup %993  ;;  %v645_v18 = vadd.f32 1e-05, %v643_v16 }
 0x6f0   :  { %v647_v13 = vmul.f32 %v994_v17, %v644_v20  ;;  %vm653_vm8 = vweird.f32 %v994_v17 }
 0x6f1   :  { %995 = vrsqrt.f32 %v645_v18  ;;  %vm654_vm4 = vmor %vm652_vm3, %vm653_vm8  ;;  %vm662_vm6 = vweird.f32 %v645_v18 }
 0x6f2   :  { %v648_v14 = vmul.f32 %v994_v17, %v647_v13 }
 0x6f4   :  { %v649_v15 = vmul.f32 0.5, %v648_v14  ;;  %v939_v56 = vpop.permute.xlu2 %938 }
 0x6f5   :  { %v940_v58 = vunpack.i.l.bf16 %v939_v56  ;;  %v941_v63 = vunpack.i.h.bf16 %v939_v56 }
 0x6f6   :  { %v650_v30 = vsub.f32 1.5, %v649_v15 }
 0x6f7   :  { %v996_v43 = vpop.eup %995  ;;  %v934_v24 = vpop.permute.xlu0 %933 }
 0x6f8   :  { %v651_v44 = vmul.f32 %v994_v17, %v650_v30  ;;  %v657_v34 = vmul.f32 %v996_v43, %v645_v18  ;;  %vm663_vm5 = vweird.f32 %v996_v43  ;;  %v935_v26 = vunpack.i.l.bf16 %v934_v24 }
 0x6f9   :  { %vm664_vm7 = vmor %vm662_vm6, %vm663_vm5  ;;  %v936_v54 = vunpack.i.h.bf16 %v934_v24 }
 0x6fa   :  { %v655_v37 = vsel %vm654_vm4, %v994_v17, %v651_v44  ;;  %v658_v45 = vmul.f32 %v996_v43, %v657_v34  ;;  %795 = vmatpush.msrb.mxu3 %v935_v26  ;;  %v954_v34 = vld [vmem:[#allocation5 + $0x83] ss:$0 sm:$0xff] }
 0x6fb   :  { %v666_v40 = vmul.f32 %v655_v37, %v632_v36 }
 0x6fc   :  { %v659_v61 = vmul.f32 0.5, %v658_v45  ;;  %796 = vmatpush.msrb.mxu3 %v936_v54 }
 0x6fd   :  { %v669_v10 = vmul.f32 %v951_v46, %v666_v40 }
 0x6fe   :  { %v660_v48 = vsub.f32 1.5, %v659_v61  ;;  %797 = vmatpush.msrb.mxu3 %v940_v58 }
 0x6ff   :  { %v672_v50 = vadd.f32 %v952_v47, %v669_v10  ;;  %v944_v3 = vpop.permute.xlu0 %943 }
 0x700   :  { %v661_v49 = vmul.f32 %v996_v43, %v660_v48  ;;  %v945_v4 = vunpack.i.l.bf16 %v944_v3  ;;  %798 = vmatpush.msrb.mxu3 %v941_v63  ;;  %v946_v6 = vunpack.i.h.bf16 %v944_v3 }
 0x701   :  { %860 = vmatmul.msk.f32.vlgmr.msra.gmra.mxu3 %vm70_vm0, %v672_v50 }
 0x702   :  { %v665_v51 = vsel %vm664_vm7, %v996_v43, %v661_v49  ;;  %799 = vmatpush.msrb.mxu3 %v945_v4 }
 0x703   :  { %v667_v52 = vmul.f32 %v665_v51, %v633_v35 }
 0x704   :  { %800 = vmatpush.msrb.mxu3 %v946_v6 }
 0x705   :  { %v670_v53 = vmul.f32 %v951_v46, %v667_v52 }
 0x707   :  { %v673_v21 = vadd.f32 %v952_v47, %v670_v53 }
 0x709   :  { %861 = vmatmul.msk.f32.gmra.mxu3 %vm70_vm0, %v673_v21 }
 0x784   :  { %v698_v60 = vpop.f32.mrf.mxu3 }
 0x785   :  { %v699_v41 = vadd.f32 %v953_v62, %v698_v60 }
 0x787   :  { %v862_v8 = vmul.f32 -1.702, %v699_v41 }
 0x789   :  { %v708_v55 = vmul.f32 1.442695, %v862_v8 }
 0x78b   :  { %997 = vpow2.f32 %v708_v55 }
 0x78c   :  { %v701_v11 = vpop.f32.mrf.mxu3 }
 0x78d   :  { %v702_v5 = vadd.f32 %v953_v62, %v701_v11 }
 0x78f   :  { %v863_v31 = vmul.f32 -1.702, %v702_v5 }
 0x791   :  { %v998_v32 = vpop.eup %997  ;;  %v710_v33 = vmul.f32 1.442695, %v863_v31 }
 0x792   :  { %v712_v36 = vadd.f32 1.0, %v998_v32 }
 0x793   :  { %999 = vpow2.f32 %v710_v33 }
 0x794   :  { %1001 = vrcp.f32 %v712_v36  ;;  %v725_v2 = vand.u32 2147483648, %v712_v36  ;;  %v723_v59 = vand.u32 2147483647, %v712_v36  ;;  %vm719_vm11 = vweird.f32 %v712_v36 }
 0x796   :  { %v726_v28 = vor.u32 1.1754944e-38, %v725_v2  ;;  %vm724_vm13 = vcmp.eq.f32.partialorder %v723_v59, 8.507059e+37 }
 0x799   :  { %v1000_v0 = vpop.eup %999 }
 0x79a   :  { %v1002_v1 = vpop.eup %1001  ;;  %v713_v12 = vadd.f32 1.0, %v1000_v0 }
 0x79b   :  { %v715_v39 = vmul.f32 %v1002_v1, %v712_v36  ;;  %vm720_vm10 = vweird.f32 %v1002_v1 }
 0x79c   :  { %1003 = vrcp.f32 %v713_v12  ;;  %vm721_vm12 = vmor %vm719_vm11, %vm720_vm10  ;;  %v740_v17 = vand.u32 2147483648, %v713_v12  ;;  %v738_v13 = vand.u32 2147483647, %v713_v12  ;;  %vm734_vm15 = vweird.f32 %v713_v12 }
 0x79d   :  { %v716_v35 = vsub.f32 1.0, %v715_v39 }
 0x79e   :  { %v741_v15 = vor.u32 1.1754944e-38, %v740_v17  ;;  %vm739_vm2 = vcmp.eq.f32.partialorder %v738_v13, 8.507059e+37 }
 0x79f   :  { %v717_v42 = vmul.f32 %v1002_v1, %v716_v35 }
 0x7a1   :  { %v718_v57 = vadd.f32 %v1002_v1, %v717_v42 }
 0x7a2   :  { %v1004_v38 = vpop.eup %1003 }
 0x7a3   :  { %v722_v29 = vsel %vm721_vm12, %v1002_v1, %v718_v57  ;;  %v730_v19 = vmul.f32 %v1004_v38, %v713_v12  ;;  %vm735_vm14 = vweird.f32 %v1004_v38 }
 0x7a4   :  { %v727_v20 = vsel %vm724_vm13, %v726_v28, %v722_v29  ;;  %vm736_vm1 = vmor %vm734_vm15, %vm735_vm14 }
 0x7a5   :  { %v744_v27 = vmul.f32 %v727_v20, %v699_v41  ;;  %v731_v16 = vsub.f32 1.0, %v730_v19 }
 0x7a7   :  { %v732_v18 = vmul.f32 %v1004_v38, %v731_v16  ;;  %864 = vmatmul.msk.f32.vlgmr.msrb.gmra.mxu3 %vm262_vm9, %v744_v27 }
 0x7a9   :  { %v733_v14 = vadd.f32 %v1004_v38, %v732_v18 }
 0x7ab   :  { %v737_v30 = vsel %vm736_vm1, %v1004_v38, %v733_v14 }
 0x7ac   :  { %v742_v43 = vsel %vm739_vm2, %v741_v15, %v737_v30 }
 0x7ad   :  { %v745_v44 = vmul.f32 %v742_v43, %v702_v5 }
 0x7af   :  { %865 = vmatmul.msk.f32.gmra.mxu3 %vm262_vm9, %v745_v44 }
 0x82a   :  { %v802_v46 = vpop.f32.mrf.mxu3 }
 0x82b   :  { %v803_v37 = vadd.f32 %v954_v34, %v802_v46 }
 0x82d   :  { %v808_v45 = vadd.f32 %v803_v37, %v1358_v9 }
 0x82f   :  { %810 = vst.msk [vmem:[#allocation7] sm:$0xff] %vm70_vm0, %v808_v45 }
 0x832   :  { %v805_v40 = vpop.f32.mrf.mxu3 }
 0x833   :  { %v806_v47 = vadd.f32 %v954_v34, %v805_v40 }
 0x835   :  { %v809_v61 = vadd.f32 %v806_v47, %v1363_v7 }
 0x837   :  { %811 = vst.msk [vmem:[#allocation7 + $0x8] sm:$0xff] %vm70_vm0, %v809_v61 }
 0x838   :  { %824 = dma.vmem_to_hbm [thread:$0]  %s817_s29, 256, %s819_s4, [#allocation4], %s1084_s17, %s1084_s17, %s1085_s18  }
 0x839   :  { %1081 = dma.done.wait [#allocation4], 256  }
 0x83a   :  { %1082 = vsyncadd [#allocation4], 4294967040 }
 0x83b   :  { %829 = vsyncpa [#allocation3], 1 }
 0x83c   :  { %830 = vsyncpa [#allocation6], 1 }
 0x83d   :  { %831 = vsyncpa [#allocation4], 1 }

</bundles_post_ra>
